<compile_context>
chip_gen: v7x
topology: tpu7x:2x2x1
jax: 0.10.0
libtpu: 0.0.40
codegen_flags: <defaults>
</compile_context>

<pallas_src>
import jax
import jax.numpy as jnp
from jax.experimental import pallas as pl
from jax.experimental.pallas import tpu as pltpu


# ---- parameter slab layout (rows x 128 lanes, f32) -------------------------
#   row 0      : W1 as a (1,20) row            (cols 0:20)
#   row 1      : b1                            (cols 0:20)
#   row 2      : b2                            (cols 0:64)
#   row 3      : b3                            (cols 0:20)
#   row 4      : W4^T as a (1,20) row          (cols 0:20)
#   row 5      : b4 scalar                     (col  0)
#   rows 8:28  : W2 (20,64)                    (cols 0:64)   [8-row aligned]
#   rows 32:96 : W3 (64,20)                    (cols 0:20)   [8-row aligned]
_SLAB_ROWS = 96
_SLAB_LANES = 128


def _mlp_kernel(x_ref, p_ref, o_ref):
    x = x_ref[...]                                             # (N, 1) f32

    # Layer 1: (N,1) @ (1,20) + b1  ==  outer product -> VPU broadcast FMA
    # (avoids a K=1 MXU pass).
    h = x * p_ref[0:1, 0:20] + p_ref[1:2, 0:20]                # (N, 20)

    # Layer 2: (N,20) @ (20,64) + b2  -- MXU
    h = jnp.dot(h, p_ref[8:28, 0:64],
                preferred_element_type=jnp.float32) + p_ref[2:3, 0:64]   # (N, 64)

    # Layer 3: (N,64) @ (64,20) + b3  -- MXU
    h = jnp.dot(h, p_ref[32:96, 0:20],
                preferred_element_type=jnp.float32) + p_ref[3:4, 0:20]   # (N, 20)

    # Layer 4: (N,20) @ (20,1) + b4  ==  per-row dot -> multiply + lane reduce
    # (avoids an N=1 MXU pass; sum goes to the XLU, not the MXU).
    out = jnp.sum(h * p_ref[4:5, 0:20], axis=-1, keepdims=True) + p_ref[5:6, 0:1]
    o_ref[...] = out.astype(o_ref.dtype)


def pack_params(params):
    """One-time packing of the 4 (W, b) pairs into a single (96,128) f32 slab.

    W are stored as (in_features, out_features); b as (out_features,).
    """
    (w1, b1), (w2, b2), (w3, b3), (w4, b4) = params
    slab = jnp.zeros((_SLAB_ROWS, _SLAB_LANES), jnp.float32)
    slab = slab.at[0, 0:20].set(w1[0, :])      # W1 row
    slab = slab.at[1, 0:20].set(b1)
    slab = slab.at[2, 0:64].set(b2)
    slab = slab.at[3, 0:20].set(b3)
    slab = slab.at[4, 0:20].set(w4[:, 0])      # W4^T row
    slab = slab.at[5, 0].set(b4[0])
    slab = slab.at[8:28, 0:64].set(w2)         # W2 (20,64), 8-row aligned
    slab = slab.at[32:96, 0:20].set(w3)        # W3 (64,20), 8-row aligned
    return slab


def line1_forward(x, slab):
    """x: (N, 1) f32; slab: packed parameters from pack_params()."""
    n = x.shape[0]
    vmem_spec = pl.BlockSpec(memory_space=pltpu.MemorySpace.VMEM)
    return pl.pallas_call(
        _mlp_kernel,
        out_shape=jax.ShapeDtypeStruct((n, 1), jnp.float32),
        in_specs=[vmem_spec, vmem_spec],
        out_specs=vmem_spec,
    )(x, slab)


def init_params(key):
    """Deterministic init mimicking PyTorch Linear default (U(-1/sqrt(fan_in), +))."""
    layer_dims = [(1, 20), (20, 64), (64, 20), (20, 1)]
    params = []
    for fan_in, fan_out in layer_dims:
        key, kw, kb = jax.random.split(key, 3)
        bound = 1.0 / (fan_in ** 0.5)
        # Stored as (in, out) -- PyTorch's (out, in) weight, transposed once here.
        w = jax.random.uniform(kw, (fan_in, fan_out), jnp.float32, -bound, bound)
        b = jax.random.uniform(kb, (fan_out,), jnp.float32, -bound, bound)
        params.append((w, b))
    return params


def reference_forward(x, params):
    h = x
    for w, b in params:
        h = h @ w + b
    return h


if __name__ == "__main__":
    key = jax.random.PRNGKey(0)

    # Same input the PyTorch script builds: arange(-20, 21).unsqueeze(1) / 20 -> (41, 1)
    xs = (jnp.arange(-20, 21, dtype=jnp.float32)[:, None]) / 20.0

    params = init_params(key)
    slab = pack_params(params)          # one-time parameter packing

    out = line1_forward(xs, slab)
    out = jax.block_until_ready(out)

    # Sanity check against a plain-JAX reference of the same MLP.
    ref = reference_forward(xs, params)
    assert out.shape == (41, 1)
    assert jnp.allclose(out, ref, atol=1e-5, rtol=1e-5)

    print("KERNEL_OK")
</pallas_src>

<mosaic_0001>
module attributes {stable_mosaic.version = 11 : i64} {
  func.func @_mlp_kernel(%arg0: memref<41x1xf32, #tpu.memory_space<vmem>>, %arg1: memref<96x128xf32, #tpu.memory_space<vmem>>, %arg2: memref<41x1xf32, #tpu.memory_space<vmem>>) attributes {dimension_semantics = [], scalar_prefetch = 0 : i64, scratch_operands = 0 : i64, tpu.core_type = #tpu.core_type<tc>} {
    %c0 = arith.constant 0 : index
    %c0_0 = arith.constant 0 : index
    %0 = vector.load %arg0[%c0, %c0_0] : memref<41x1xf32, #tpu.memory_space<vmem>>, vector<41x1xf32>
    %c0_1 = arith.constant 0 : index
    %c0_2 = arith.constant 0 : index
    %1 = vector.load %arg1[%c0_1, %c0_2] : memref<96x128xf32, #tpu.memory_space<vmem>>, vector<1x20xf32>
    %2 = vector.broadcast %0 : vector<41x1xf32> to vector<41x20xf32>
    %3 = vector.broadcast %1 : vector<1x20xf32> to vector<41x20xf32>
    %4 = arith.mulf %2, %3 : vector<41x20xf32>
    %c1 = arith.constant 1 : index
    %c0_3 = arith.constant 0 : index
    %5 = vector.load %arg1[%c1, %c0_3] : memref<96x128xf32, #tpu.memory_space<vmem>>, vector<1x20xf32>
    %6 = vector.broadcast %5 : vector<1x20xf32> to vector<41x20xf32>
    %7 = arith.addf %4, %6 : vector<41x20xf32>
    %c8 = arith.constant 8 : index
    %c0_4 = arith.constant 0 : index
    %8 = vector.load %arg1[%c8, %c0_4] : memref<96x128xf32, #tpu.memory_space<vmem>>, vector<20x64xf32>
    %cst = arith.constant dense<0.000000e+00> : vector<41x64xf32>
    %9 = tpu.matmul %7, %8, %cst {dimension_numbers = #tpu.dot_dimension_numbers<[1], [0], [0], [1], [0, 0, 1, 1], [], []>} : vector<41x20xf32>, vector<20x64xf32>, vector<41x64xf32> -> vector<41x64xf32>
    %c2 = arith.constant 2 : index
    %c0_5 = arith.constant 0 : index
    %10 = vector.load %arg1[%c2, %c0_5] : memref<96x128xf32, #tpu.memory_space<vmem>>, vector<1x64xf32>
    %11 = vector.broadcast %10 : vector<1x64xf32> to vector<41x64xf32>
    %12 = arith.addf %9, %11 : vector<41x64xf32>
    %c32 = arith.constant 32 : index
    %c0_6 = arith.constant 0 : index
    %13 = vector.load %arg1[%c32, %c0_6] : memref<96x128xf32, #tpu.memory_space<vmem>>, vector<64x20xf32>
    %cst_7 = arith.constant dense<0.000000e+00> : vector<41x20xf32>
    %14 = tpu.matmul %12, %13, %cst_7 {dimension_numbers = #tpu.dot_dimension_numbers<[1], [0], [0], [1], [0, 0, 1, 1], [], []>} : vector<41x64xf32>, vector<64x20xf32>, vector<41x20xf32> -> vector<41x20xf32>
    %c3 = arith.constant 3 : index
    %c0_8 = arith.constant 0 : index
    %15 = vector.load %arg1[%c3, %c0_8] : memref<96x128xf32, #tpu.memory_space<vmem>>, vector<1x20xf32>
    %16 = vector.broadcast %15 : vector<1x20xf32> to vector<41x20xf32>
    %17 = arith.addf %14, %16 : vector<41x20xf32>
    %c4 = arith.constant 4 : index
    %c0_9 = arith.constant 0 : index
    %18 = vector.load %arg1[%c4, %c0_9] : memref<96x128xf32, #tpu.memory_space<vmem>>, vector<1x20xf32>
    %19 = vector.broadcast %18 : vector<1x20xf32> to vector<41x20xf32>
    %20 = arith.mulf %17, %19 : vector<41x20xf32>
    %cst_10 = arith.constant dense<0.000000e+00> : vector<41xf32>
    %21 = vector.multi_reduction <add>, %20, %cst_10 [1] : vector<41x20xf32> to vector<41xf32>
    %22 = vector.shape_cast %21 : vector<41xf32> to vector<41x1xf32>
    %c5 = arith.constant 5 : index
    %c0_11 = arith.constant 0 : index
    %23 = vector.load %arg1[%c5, %c0_11] : memref<96x128xf32, #tpu.memory_space<vmem>>, vector<1x1xf32>
    %24 = vector.broadcast %23 : vector<1x1xf32> to vector<41x1xf32>
    %25 = arith.addf %22, %24 : vector<41x1xf32>
    %c0_12 = arith.constant 0 : index
    %c0_13 = arith.constant 0 : index
    %26 = vector.load %arg2[%c0_12, %c0_13] : memref<41x1xf32, #tpu.memory_space<vmem>>, vector<41x1xf32>
    tpu.vector_store %arg2[%c0_12, %c0_13], %25 {strides = array<i32>} : memref<41x1xf32, #tpu.memory_space<vmem>>, vector<41x1xf32>,
    return
  }
}

</mosaic_0001>

<bundles_post_ra>
// kernel: tpu_custom_call.1
= control target key start
LH: loop header
LB: loop body
LE: loop exit
PB: predicated region body
PF: predicated region fallthrough
CT: control target
= control target key end

     0   :  { %7 = vsyncpa [#allocation3], 0  ;;  %s522_s9 = smov [#allocation2]   ;;  %s606_s0 = inlined_call_operand.vmem [shape: f32[41,1], index: 0, kind: input, shape index: {}]   ;;  %s607_s1 = inlined_call_operand.hbm [shape: f32[96,128], index: 1, kind: input, shape index: {}]   ;;  %s608_s2 = inlined_call_operand.vmem [shape: f32[41,1], index: 2, kind: output, shape index: {}]  }
   0x1   :  { %s15_s10 = sshll.u32 %s522_s9, 4  ;;  %s498_s13 = scalar_lea.hbm %s607_s1, 1536  ;;  %s16_s10 = int_to_ptr.vmem [resolvable:$true] %s15_s10 }
   0x2   :  { %p499_p0 = scmp.ne.s32.totalorder %s607_s1, %s498_s13  ;;  %p502_p1 = scmp.lt.u32.totalorder %s498_s13, %s607_s1 }
   0x4   :  { %p504_p2 = pnand %p502_p1, %p499_p0 }
   0x6   :  { %507 = shalt.err (!%p504_p2)
}
   0x7   :  { %s508_s18 = scalar_lea.vmem %s16_s10, 1536  ;;  %p513_p4 = scmp.lt.s32.totalorder %s16_s10, %s16_s10 }
   0x8   :  { %p509_p3 = scmp.ne.s32.totalorder %s16_s10, %s508_s18  ;;  %p514_p5 = scmp.lt.s32.totalorder %s508_s18, %s508_s18 }
   0xa   :  { %p515_p6 = por %p514_p5, %p513_p4 }
   0xc   :  { %p516_p7 = pnand %p515_p6, %p509_p3 }
   0xe   :  { %519 = shalt.err (!%p516_p7)
}
   0xf   :  { %s523_s19 = smov 128   ;;  %s524_s20 = smov 8  }
  0x10   :  { %21 = dma.hbm_to_vmem [thread:$0]  %s607_s1, 1536, %s16_s10, [#allocation3], %s523_s19, %s523_s19, %s524_s20  }
  0x11   :  { %520 = dma.done.wait [#allocation3], 1536  }
  0x12   :  { %521 = vsyncadd [#allocation3], 4294965760  ;;  %v525_v0 = vmov 0   ;;  %v27_v1 = vld [vmem:[%s606_s0 + $0x10] sm:$0xff]  ;;  %v25_v2 = vld [vmem:[%s606_s0] sm:$0xff]  ;;  %vm110_vm0 = vcmask 1043456  }
  0x13   :  { %497 = vset.pattern.permute.xlu1 %v525_v0  ;;  %496 = vset.pattern.permute.xlu0 %v525_v0  ;;  %v28_v3 = vld [vmem:[%s606_s0 + $0x18] sm:$0xff]  ;;  %v26_v4 = vld [vmem:[%s606_s0 + $0x8] sm:$0xff]  ;;  %v84_v6 = vld [vmem:[#allocation2 + $0x10] sm:$0xff]  ;;  %vm91_vm1 = vcmask 162816   ;;  %vm222_vm2 = vcmask 523264   ;;  %vm362_vm3 = vcmask 155648  }
  0x14   :  { %44 = vperm.xlu1 %497, %v27_v1   ;;  %34 = vperm.xlu0 %496, %v25_v2   ;;  %v83_v5 = vld [vmem:[#allocation2 + $0x8] sm:$0xff]  ;;  %v29_v9 = vld [vmem:[%s606_s0 + $0x20] sm:$0xff]  ;;  %v85_v10 = vld [vmem:[#allocation2 + $0x18] sm:$0xf]  ;;  %vm377_vm4 = vcmask 7168   ;;  %vm383_vm5 = vcmask 0  }
  0x15   :  { %v472_v7 = vpack.c.bf16 %v84_v6, %v83_v5  ;;  %v30_v8 = vld [vmem:[%s606_s0 + $0x28] sm:$0x1]  ;;  %v209_v11 = vld [vmem:[#allocation2 + $0x20] sm:$0xff]  ;;  %v211_v13 = vld [vmem:[#allocation2 + $0x30] sm:$0xff] }
  0x16   :  { %v210_v12 = vld [vmem:[#allocation2 + $0x28] sm:$0xff]  ;;  %v212_v15 = vld [vmem:[#allocation2 + $0x38] sm:$0xff]  ;;  %v213_v17 = vld [vmem:[#allocation2 + $0x40] sm:$0xff] }
  0x17   :  { %473 = vmatprep.subr.bf16.mxu0 %v472_v7  ;;  %v476_v14 = vpack.c.bf16 %v210_v12, %v209_v11  ;;  %v480_v16 = vpack.c.bf16 %v212_v15, %v211_v13  ;;  %v214_v18 = vld [vmem:[#allocation2 + $0x48] sm:$0xff]  ;;  %v390_v20 = vld [vmem:[#allocation2] ss:$0 sm:$0xff]  ;;  %v391_v21 = vld [vmem:[#allocation2 + $0x1] ss:$0 sm:$0xff] }
  0x18   :  { %49 = vperm.xlu1 %497, %v28_v3   ;;  %39 = vperm.xlu0 %496, %v26_v4   ;;  %v484_v19 = vpack.c.bf16 %v214_v18, %v213_v17  ;;  %v215_v40 = vld [vmem:[#allocation2 + $0x50] sm:$0xff]  ;;  %v216_v41 = vld [vmem:[#allocation2 + $0x58] sm:$0xff]  ;;  %v392_v43 = vld [vmem:[#allocation2 + $0x2] ss:$0 sm:$0xff] }
  0x19   :  { %475 = vmatpush3.bf16.msra.mxu0 %v472_v7  ;;  %477 = vmatprep.subr.bf16.mxu1 %v476_v14  ;;  %v488_v42 = vpack.c.bf16 %v216_v41, %v215_v40  ;;  %v400_v56 = vld [vmem:[#allocation2 + $0x3] ss:$0 sm:$0xff]  ;;  %v407_v58 = vld [vmem:[#allocation2 + $0x4] ss:$0 sm:$0xff]  ;;  %v408_v18 = vld [vmem:[#allocation2 + $0x5] ss:$0 sm:$0xff] }
  0x1a   :  { %436 = vmatprep.subr.msk.mxu0 %vm110_vm0, %v85_v10  ;;  %479 = vmatpush3.bf16.msra.mxu1 %v476_v14 }
  0x1b   :  { %481 = vmatprep.subr.bf16.mxu1 %v480_v16 }
  0x1c   :  { %59 = vperm.xlu1 %497, %v30_v8   ;;  %54 = vperm.xlu0 %496, %v29_v9  }
  0x1d   :  { %437 = vmatpush3.msk.msra.mxu0 %vm110_vm0, %v85_v10 }
  0x1e   :  { %483 = vmatpush3.bf16.msra.mxu1 %v480_v16 }
  0x1f   :  { %485 = vmatprep.subr.bf16.mxu1 %v484_v19 }
  0x22   :  { %487 = vmatpush3.bf16.msra.mxu1 %v484_v19 }
  0x23   :  { %489 = vmatprep.subr.bf16.mxu1 %v488_v42 }
  0x26   :  { %491 = vmatpush3.bf16.msra.mxu1 %v488_v42 }
  0x93   :  { %v45_v22 = vpop.permute.xlu1 %44  ;;  %v35_v23 = vpop.permute.xlu0 %34 }
  0x94   :  { %v66_v24 = vmul.f32 %v390_v20, %v35_v23  ;;  %v68_v25 = vmul.f32 %v390_v20, %v45_v22 }
  0x96   :  { %v77_v26 = vadd.f32 %v391_v21, %v66_v24  ;;  %v79_v30 = vadd.f32 %v391_v21, %v68_v25 }
  0x97   :  { %v50_v27 = vpop.permute.xlu1 %49  ;;  %v40_v28 = vpop.permute.xlu0 %39 }
  0x98   :  { %v67_v29 = vmul.f32 %v390_v20, %v40_v28  ;;  %438 = vmatprep.mubr.msk.f32.mxu0 %vm91_vm1, %v77_v26  ;;  %v69_v31 = vmul.f32 %v390_v20, %v50_v27 }
  0x9a   :  { %v78_v32 = vadd.f32 %v391_v21, %v67_v29  ;;  %v80_v36 = vadd.f32 %v391_v21, %v69_v31 }
  0x9b   :  { %v60_v33 = vpop.permute.xlu1 %59  ;;  %v55_v34 = vpop.permute.xlu0 %54 }
  0x9c   :  { %v70_v35 = vmul.f32 %v390_v20, %v55_v34  ;;  %439 = vmatmul.mubr.msk.f32.vlgmr.msra.gmra.mrb[0].mxu0 %vm91_vm1, %v78_v32  ;;  %v71_v37 = vmul.f32 %v390_v20, %v60_v33 }
  0x9d   :  { %441 = vmatprep.mubr.msk.f32.mxu0 %vm91_vm1, %v79_v30 }
  0x9e   :  { %v81_v38 = vadd.f32 %v391_v21, %v70_v35  ;;  %v82_v39 = vadd.f32 %v391_v21, %v71_v37 }
  0xa0   :  { %442 = vmatmul.mubr.msk.f32.gmra.mrb[2].mxu0 %vm91_vm1, %v80_v36 }
  0xa1   :  { %444 = vmatprep.mubr.msk.f32.mxu0 %vm91_vm1, %v81_v38 }
  0xa4   :  { %445 = vmatmul.mubr.msk.f32.gmra.mrb[4].mxu0 %vm91_vm1, %v82_v39 }
 0x16f   :  { %v440_v44 = vpop.f32.mrb[0].mxu0 }
 0x170   :  { %v180_v45 = vpop.f32.mrb[1].mxu0  ;;  %v186_v47 = vadd.f32 %v440_v44, %v392_v43 }
 0x171   :  { %v181_v46 = vadd.f32 %v392_v43, %v180_v45 }
 0x173   :  { %v443_v48 = vpop.f32.mrb[2].mxu0  ;;  %463 = vmatprep.mubr.msk.f32.mxu1 %vm222_vm2, %v181_v46 }
 0x174   :  { %v190_v49 = vpop.f32.mrb[3].mxu0  ;;  %464 = vmatmul.mubr.msk.f32.vlgmr.msra.gmra.mrb[0].mxu1 %vm222_vm2, %v186_v47  ;;  %v196_v51 = vadd.f32 %v443_v48, %v392_v43 }
 0x175   :  { %v191_v50 = vadd.f32 %v392_v43, %v190_v49 }
 0x177   :  { %v446_v52 = vpop.f32.mrb[4].mxu0  ;;  %466 = vmatprep.mubr.msk.f32.mxu1 %vm222_vm2, %v191_v50 }
 0x178   :  { %v200_v53 = vpop.f32.mrb[5].mxu0  ;;  %467 = vmatmul.mubr.msk.f32.gmra.mrb[2].mxu1 %vm222_vm2, %v196_v51  ;;  %v206_v55 = vadd.f32 %v446_v52, %v392_v43 }
 0x179   :  { %v201_v54 = vadd.f32 %v392_v43, %v200_v53 }
 0x17b   :  { %469 = vmatprep.mubr.msk.f32.mxu1 %vm222_vm2, %v201_v54 }
 0x17c   :  { %470 = vmatmul.mubr.msk.f32.gmra.mrb[4].mxu1 %vm222_vm2, %v206_v55 }
 0x247   :  { %v465_v57 = vpop.f32.mrb[0].mxu1 }
 0x248   :  { %v313_v59 = vadd.f32 %v465_v57, %v400_v56  ;;  %v307_v60 = vpop.f32.mrb[1].mxu1 }
 0x249   :  { %v308_v61 = vadd.f32 %v400_v56, %v307_v60 }
 0x24a   :  { %v342_v62 = vmul.f32 %v407_v58, %v313_v59 }
 0x24b   :  { %v468_v63 = vpop.f32.mrb[2].mxu1  ;;  %v341_v0 = vmul.f32 %v407_v58, %v308_v61 }
 0x24c   :  { %v323_v1 = vadd.f32 %v468_v63, %v400_v56  ;;  %v317_v2 = vpop.f32.mrb[3].mxu1  ;;  %v350_v3 = vsel %vm91_vm1, %v342_v62, 0.0 }
 0x24d   :  { %v318_v4 = vadd.f32 %v400_v56, %v317_v2  ;;  %351 = vadd.xlane.f32.xlu1 %v350_v3  ;;  %v347_v5 = vsel %vm91_vm1, %v341_v0, 0.0 }
 0x24e   :  { %348 = vadd.xlane.f32.xlu0 %v347_v5  ;;  %v344_v6 = vmul.f32 %v407_v58, %v323_v1 }
 0x24f   :  { %v471_v7 = vpop.f32.mrb[4].mxu1  ;;  %v343_v12 = vmul.f32 %v407_v58, %v318_v4 }
 0x250   :  { %v327_v8 = vpop.f32.mrb[5].mxu1  ;;  %v356_v9 = vsel %vm91_vm1, %v344_v6, 0.0  ;;  %v333_v10 = vadd.f32 %v471_v7, %v400_v56 }
 0x251   :  { %v328_v11 = vadd.f32 %v400_v56, %v327_v8  ;;  %v353_v14 = vsel %vm91_vm1, %v343_v12, 0.0 }
 0x252   :  { %357 = vadd.xlane.f32.xlu0 %v356_v9  ;;  %v346_v16 = vmul.f32 %v407_v58, %v333_v10 }
 0x253   :  { %v345_v13 = vmul.f32 %v407_v58, %v328_v11 }
 0x254   :  { %v363_v17 = vsel %vm362_vm3, %v346_v16, 0.0 }
 0x255   :  { %v359_v15 = vsel %vm91_vm1, %v345_v13, 0.0 }
 0x256   :  { %354 = vadd.xlane.f32.xlu0 %v353_v14  ;;  %360 = vadd.xlane.f32.xlu1 %v359_v15 }
 0x25a   :  { %364 = vadd.xlane.f32.xlu0 %v363_v17 }
 0x2da   :  { %v352_v19 = vpop.xlane.xlu1 %351 }
 0x2db   :  { %v372_v20 = vadd.f32 %v408_v18, %v352_v19  ;;  %v349_v21 = vpop.xlane.xlu0 %348 }
 0x2dc   :  { %v371_v22 = vadd.f32 %v408_v18, %v349_v21 }
 0x2dd   :  { %379 = vst.msk [vmem:[%s608_s2 + $0x8] sm:$0xff] %vm377_vm4, %v372_v20 }
 0x2de   :  { %378 = vst.msk [vmem:[%s608_s2] sm:$0xff] %vm377_vm4, %v371_v22 }
 0x2df   :  { %v358_v23 = vpop.xlane.xlu0 %357 }
 0x2e0   :  { %v374_v24 = vadd.f32 %v408_v18, %v358_v23 }
 0x2e2   :  { %381 = vst.msk [vmem:[%s608_s2 + $0x18] sm:$0xff] %vm377_vm4, %v374_v24 }
 0x2e3   :  { %v361_v25 = vpop.xlane.xlu1 %360  ;;  %v355_v26 = vpop.xlane.xlu0 %354 }
 0x2e4   :  { %v375_v27 = vadd.f32 %v408_v18, %v361_v25  ;;  %v373_v28 = vadd.f32 %v408_v18, %v355_v26 }
 0x2e6   :  { %382 = vst.msk [vmem:[%s608_s2 + $0x20] sm:$0xff] %vm377_vm4, %v375_v27  ;;  %380 = vst.msk [vmem:[%s608_s2 + $0x10] sm:$0xff] %vm377_vm4, %v373_v28 }
 0x2e7   :  { %v365_v29 = vpop.xlane.xlu0 %364 }
 0x2e8   :  { %v376_v30 = vadd.f32 %v408_v18, %v365_v29 }
 0x2ea   :  { %384 = vst.msk [vmem:[%s608_s2 + $0x28] sm:$0x1] %vm383_vm5, %v376_v30 }
 0x2eb   :  { %389 = vsyncpa [#allocation3], 1 }

</bundles_post_ra>
